<compile_context>
chip_gen: v6e
topology: v6e:2x2x1
jax: 0.10.0
libtpu: 0.0.40
codegen_flags: <defaults>
</compile_context>

<pallas_src>
import math

import jax
import jax.numpy as jnp
from jax.experimental import pallas as pl
from jax.experimental.pallas import tpu as pltpu


def _round_up(x, m):
    return ((x + m - 1) // m) * m


def _cdiv(a, b):
    return -(-a // b)


def _fold_bn(bias, gamma, beta, mean, var, eps=1e-5):
    scale = gamma / jnp.sqrt(var + eps)
    shift = beta + (bias - mean) * scale
    return scale, shift


def _tcn_kernel(x_ref, w0_ref, b0_ref, w1_ref, b1_ref, o_ref):
    x = x_ref[...]
    gc = o_ref.shape[-1]
    # conv0 (3x1 strided conv as matmul; BN0 scale folded into w0) + shift + ReLU
    h = jnp.dot(x, w0_ref[...], preferred_element_type=jnp.float32)
    h = jnp.maximum(h + b0_ref[...], 0.0)
    # conv1 (1x1 conv as matmul; BN1 scale folded into w1) + shift + ReLU
    y = jnp.dot(h.astype(w1_ref.dtype), w1_ref[...], preferred_element_type=jnp.float32)
    y = jnp.maximum(y + b1_ref[...], 0.0)
    # residual = center time tap: contiguous lane slice (vreg-aligned when gc % 128 == 0)
    res = x[:, gc:2 * gc].astype(jnp.float32)
    o_ref[...] = (y + res).astype(o_ref.dtype)


def tcn_unit_forward(x, params, *, tm=1024, input_dtype=jnp.bfloat16,
                     out_dtype=jnp.float32, lane_mult=128):
    """x: (N, C, T, V), T divisible by 3. Returns (N, C, T//3, V) in `out_dtype`.

    lane_mult: target multiple for the packed output lane width (128 default;
    256 is worth sweeping on v7x to fill the wider MXU N dimension).
    """
    N, C, T, V = x.shape
    assert T % 3 == 0, "conv0 has kernel/stride (3,1); T must be divisible by 3"
    To = T // 3
    M = N * To * V

    # Lane-grouping: pack G consecutive rows so G*C is a multiple of `lane_mult`
    # -> lane-dense, unmasked output stores.  Cap footprint; G=1 fallback stays correct.
    G = lane_mult // math.gcd(C, lane_mult)
    if G * C > 1024:
        G = 1
    GC = G * C

    itemsize_in = jnp.dtype(input_dtype).itemsize
    itemsize_out = jnp.dtype(out_dtype).itemsize
    # bf16 packs 2 rows per sublane: align rows/tiles to 16 to avoid packed relayouts.
    row_align = 16 if itemsize_in < 4 else 8

    Mg = _cdiv(M, G)                                   # grouped rows needed
    tm = _round_up(max(row_align, tm), row_align)
    if Mg <= tm:
        # Whole problem fits one tile: shrink it, but keep >= 2 grid steps when the
        # problem permits so both v7x TensorCores get work (no effect on v5e/v6e).
        tm = _round_up(_cdiv(Mg, 2), row_align) if Mg >= 2 * row_align else row_align
    Mg_pad = _cdiv(Mg, tm) * tm
    M_row_pad = Mg_pad * G

    # ---- layout plumbing: (N, C, T, V) -> rows (n, to, v), features ordered (k, g, ci)
    x_rows = jnp.transpose(x.reshape(N, C, To, 3, V), (0, 2, 4, 3, 1)).reshape(M, 3 * C)
    if M_row_pad != M:
        x_rows = jnp.pad(x_rows, ((0, M_row_pad - M), (0, 0)))
    x_g = jnp.transpose(x_rows.reshape(Mg_pad, G, 3, C), (0, 2, 1, 3))
    x_g = x_g.reshape(Mg_pad, 3 * GC).astype(input_dtype)

    # ---- fold conv bias + eval-mode BN into weights (scale) and per-channel shifts ----
    s0, b0 = _fold_bn(params["b0"], params["g0"], params["be0"], params["m0"], params["v0"])
    s1, b1 = _fold_bn(params["b1"], params["g1"], params["be1"], params["m1"], params["v1"])

    # conv0 weight (Co, Ci, 3, 1) -> per-tap (3, Ci, Co), BN0 scale folded into columns.
    W0k = jnp.transpose(params["w0"][:, :, :, 0], (2, 1, 0)) * s0[None, None, :]
    # conv1 weight (Co, Ci, 1, 1) -> (Ci, Co), BN1 scale folded in.
    W1f = jnp.transpose(params["w1"][:, :, 0, 0], (1, 0)) * s1[None, :]

    eyeG = jnp.eye(G, dtype=jnp.float32)
    # Rows ordered (k, g, ci), columns (g, co): stack per-tap block-diagonals over k.
    W0_big = jnp.concatenate([jnp.kron(eyeG, W0k[k]) for k in range(3)], axis=0)
    W1_big = jnp.kron(eyeG, W1f)
    W0_big = W0_big.astype(input_dtype)                # (3*GC, GC)
    W1_big = W1_big.astype(input_dtype)                # (GC, GC)
    b0_big = jnp.tile(b0, G).reshape(1, GC).astype(jnp.float32)
    b1_big = jnp.tile(b1, G).reshape(1, GC).astype(jnp.float32)

    # ---- advisory cost + explicit VMEM budget ----
    flops = 2 * Mg_pad * (3 * GC * GC + GC * GC)
    bytes_accessed = (Mg_pad * 3 * GC * itemsize_in          # x rows
                      + Mg_pad * GC * itemsize_out           # output
                      + (3 * GC + GC) * GC * itemsize_in     # weights
                      + 2 * GC * 4)                          # shifts
    blk_bytes = 2 * (tm * 3 * GC * itemsize_in
                     + tm * GC * itemsize_out
                     + (3 * GC + GC) * GC * itemsize_in
                     + 2 * GC * 4)
    vmem_limit = int(min(56 << 20, max(32 << 20, 2 * blk_bytes)))

    out_g = pl.pallas_call(
        _tcn_kernel,
        out_shape=jax.ShapeDtypeStruct((Mg_pad, GC), out_dtype),
        grid_spec=pltpu.PrefetchScalarGridSpec(
            num_scalar_prefetch=0,
            grid=(Mg_pad // tm,),
            in_specs=[
                pl.BlockSpec((tm, 3 * GC), lambda i: (i, 0)),   # X rows (k, g, ci)
                pl.BlockSpec((3 * GC, GC), lambda i: (0, 0)),   # W0 (scale-folded)
                pl.BlockSpec((1, GC), lambda i: (0, 0)),        # shift0
                pl.BlockSpec((GC, GC), lambda i: (0, 0)),       # W1 (scale-folded)
                pl.BlockSpec((1, GC), lambda i: (0, 0)),        # shift1
            ],
            out_specs=pl.BlockSpec((tm, GC), lambda i: (i, 0)),
        ),
        compiler_params=pltpu.CompilerParams(
            dimension_semantics=("parallel",),
            vmem_limit_bytes=vmem_limit),
        cost_estimate=pl.CostEstimate(flops=flops, transcendentals=0,
                                      bytes_accessed=bytes_accessed),
    )(x_g, W0_big, b0_big, W1_big, b1_big)

    # un-group, drop padding, back to NCHW: (Mg_pad, G*C) -> (M, C) -> (N, C, To, V)
    out_rows = out_g.reshape(M_row_pad, C)[:M]
    return jnp.transpose(out_rows.reshape(N, To, V, C), (0, 3, 1, 2))


def _reference(x, params):
    """Pure-JAX reference of the PyTorch forward (eval-mode BN)."""
    N, C, T, V = x.shape
    To = T // 3
    eps = 1e-5

    def bn(y, g, be, m, v):
        return (y - m[None, :, None, None]) / jnp.sqrt(v[None, :, None, None] + eps) \
               * g[None, :, None, None] + be[None, :, None, None]

    res = x[:, :, 1::3]
    xr = x.reshape(N, C, To, 3, V)
    h = jnp.einsum("ncokv,dck->ndov", xr, params["w0"][:, :, :, 0]) \
        + params["b0"][None, :, None, None]
    h = jnp.maximum(bn(h, params["g0"], params["be0"], params["m0"], params["v0"]), 0.0)
    y = jnp.einsum("ncov,dc->ndov", h, params["w1"][:, :, 0, 0]) \
        + params["b1"][None, :, None, None]
    y = jnp.maximum(bn(y, params["g1"], params["be1"], params["m1"], params["v1"]), 0.0)
    return y + res


if __name__ == "__main__":
    key = jax.random.PRNGKey(0)
    N, C, T, V = 2, 4, 18, 16  # T divisible by 3 -> T_out = 6; M = 2*6*16 = 192

    ks = jax.random.split(key, 12)
    params = {
        "w0": 0.1 * jax.random.normal(ks[0], (C, C, 3, 1), jnp.float32),
        "b0": 0.1 * jax.random.normal(ks[1], (C,), jnp.float32),
        "g0": 1.0 + 0.1 * jax.random.normal(ks[2], (C,), jnp.float32),
        "be0": 0.1 * jax.random.normal(ks[3], (C,), jnp.float32),
        "m0": 0.1 * jax.random.normal(ks[4], (C,), jnp.float32),
        "v0": 0.5 + jnp.abs(jax.random.normal(ks[5], (C,), jnp.float32)),
        "w1": 0.1 * jax.random.normal(ks[6], (C, C, 1, 1), jnp.float32),
        "b1": 0.1 * jax.random.normal(ks[7], (C,), jnp.float32),
        "g1": 1.0 + 0.1 * jax.random.normal(ks[8], (C,), jnp.float32),
        "be1": 0.1 * jax.random.normal(ks[9], (C,), jnp.float32),
        "m1": 0.1 * jax.random.normal(ks[10], (C,), jnp.float32),
        "v1": 0.5 + jnp.abs(jax.random.normal(ks[11], (C,), jnp.float32)),
    }
    x = jax.random.normal(jax.random.PRNGKey(42), (N, C, T, V), jnp.float32)

    ref = _reference(x, params)

    # f32 path (strict correctness check of the kernel logic / layout)
    out_f32 = jax.block_until_ready(
        tcn_unit_forward(x, params, input_dtype=jnp.float32))
    assert out_f32.shape == (N, C, T // 3, V)
    assert jnp.allclose(out_f32, ref, atol=1e-4, rtol=1e-4), "f32 kernel mismatch vs reference"

    # default path: bf16 inputs/weights, f32 accumulate + f32 output
    out_bf16 = jax.block_until_ready(tcn_unit_forward(x, params))
    assert out_bf16.shape == (N, C, T // 3, V)
    assert jnp.allclose(out_bf16, ref, atol=5e-2, rtol=5e-2), "bf16 kernel mismatch vs reference"

    # all-bf16 path (bf16 writeback for a bf16 consumer)
    out_bf16o = jax.block_until_ready(
        tcn_unit_forward(x, params, out_dtype=jnp.bfloat16))
    assert out_bf16o.dtype == jnp.bfloat16
    assert jnp.allclose(out_bf16o.astype(jnp.float32), ref, atol=1e-1, rtol=1e-1), \
        "bf16-out kernel mismatch vs reference"

    print("KERNEL_OK")
</pallas_src>

<mosaic_0001>
module attributes {stable_mosaic.version = 11 : i64} {
  func.func @_tcn_kernel(%arg0: i32, %arg1: memref<8x384xf32, #tpu.memory_space<vmem>>, %arg2: memref<384x128xf32, #tpu.memory_space<vmem>>, %arg3: memref<1x128xf32, #tpu.memory_space<vmem>>, %arg4: memref<128x128xf32, #tpu.memory_space<vmem>>, %arg5: memref<1x128xf32, #tpu.memory_space<vmem>>, %arg6: memref<8x128xf32, #tpu.memory_space<vmem>>) attributes {dimension_semantics = [#tpu.dimension_semantics<parallel>], iteration_bounds = array<i64: 1>, scalar_prefetch = 0 : i64, scratch_operands = 0 : i64, tpu.core_type = #tpu.core_type<tc>, window_params = [{transform_indices = @transform_0, window_bounds = array<i64: 8, 384>}, {pipeline_mode = #tpu.pipeline_mode<synchronous>, transform_indices = @transform_1, window_bounds = array<i64: 384, 128>}, {pipeline_mode = #tpu.pipeline_mode<synchronous>, transform_indices = @transform_2, window_bounds = array<i64: 1, 128>}, {pipeline_mode = #tpu.pipeline_mode<synchronous>, transform_indices = @transform_3, window_bounds = array<i64: 128, 128>}, {pipeline_mode = #tpu.pipeline_mode<synchronous>, transform_indices = @transform_4, window_bounds = array<i64: 1, 128>}, {transform_indices = @transform_5, window_bounds = array<i64: 8, 128>}]} {
    %c0 = arith.constant 0 : index
    %c0_0 = arith.constant 0 : index
    %0 = vector.load %arg1[%c0, %c0_0] : memref<8x384xf32, #tpu.memory_space<vmem>>, vector<8x384xf32>
    %c0_1 = arith.constant 0 : index
    %c0_2 = arith.constant 0 : index
    %1 = vector.load %arg2[%c0_1, %c0_2] : memref<384x128xf32, #tpu.memory_space<vmem>>, vector<384x128xf32>
    %cst = arith.constant dense<0.000000e+00> : vector<8x128xf32>
    %2 = tpu.matmul %0, %1, %cst {dimension_numbers = #tpu.dot_dimension_numbers<[1], [0], [0], [1], [0, 0, 1, 1], [], []>} : vector<8x384xf32>, vector<384x128xf32>, vector<8x128xf32> -> vector<8x128xf32>
    %c0_3 = arith.constant 0 : index
    %c0_4 = arith.constant 0 : index
    %3 = vector.load %arg3[%c0_3, %c0_4] : memref<1x128xf32, #tpu.memory_space<vmem>>, vector<1x128xf32>
    %4 = vector.broadcast %3 : vector<1x128xf32> to vector<8x128xf32>
    %5 = arith.addf %2, %4 : vector<8x128xf32>
    %cst_5 = arith.constant 0.000000e+00 : f32
    %6 = vector.broadcast %cst_5 : f32 to vector<8x128xf32>
    %7 = arith.maximumf %5, %6 : vector<8x128xf32>
    %c0_6 = arith.constant 0 : index
    %c0_7 = arith.constant 0 : index
    %8 = vector.load %arg4[%c0_6, %c0_7] : memref<128x128xf32, #tpu.memory_space<vmem>>, vector<128x128xf32>
    %cst_8 = arith.constant dense<0.000000e+00> : vector<8x128xf32>
    %9 = tpu.matmul %7, %8, %cst_8 {dimension_numbers = #tpu.dot_dimension_numbers<[1], [0], [0], [1], [0, 0, 1, 1], [], []>} : vector<8x128xf32>, vector<128x128xf32>, vector<8x128xf32> -> vector<8x128xf32>
    %c0_9 = arith.constant 0 : index
    %c0_10 = arith.constant 0 : index
    %10 = vector.load %arg5[%c0_9, %c0_10] : memref<1x128xf32, #tpu.memory_space<vmem>>, vector<1x128xf32>
    %11 = vector.broadcast %10 : vector<1x128xf32> to vector<8x128xf32>
    %12 = arith.addf %9, %11 : vector<8x128xf32>
    %cst_11 = arith.constant 0.000000e+00 : f32
    %13 = vector.broadcast %cst_11 : f32 to vector<8x128xf32>
    %14 = arith.maximumf %12, %13 : vector<8x128xf32>
    %15 = vector.extract_strided_slice %0 {offsets = [0, 128], sizes = [8, 128], strides = [1, 1]} : vector<8x384xf32> to vector<8x128xf32>
    %16 = arith.addf %14, %15 : vector<8x128xf32>
    %c0_12 = arith.constant 0 : index
    %c0_13 = arith.constant 0 : index
    %17 = vector.load %arg6[%c0_12, %c0_13] : memref<8x128xf32, #tpu.memory_space<vmem>>, vector<8x128xf32>
    tpu.vector_store %arg6[%c0_12, %c0_13], %16 {strides = array<i32>} : memref<8x128xf32, #tpu.memory_space<vmem>>, vector<8x128xf32>,
    return
  }
  func.func @transform_0(%arg0: i32) -> (i32, i32) {
    %c0_i32 = arith.constant 0 : i32
    %c0_i32_0 = arith.constant 0 : i32
    return %arg0, %c0_i32 : i32, i32
  }
  func.func @transform_1(%arg0: i32) -> (i32, i32) {
    %c0_i32 = arith.constant 0 : i32
    %c0_i32_0 = arith.constant 0 : i32
    %c0_i32_1 = arith.constant 0 : i32
    return %c0_i32, %c0_i32_0 : i32, i32
  }
  func.func @transform_2(%arg0: i32) -> (i32, i32) {
    %c0_i32 = arith.constant 0 : i32
    %c0_i32_0 = arith.constant 0 : i32
    %c0_i32_1 = arith.constant 0 : i32
    return %c0_i32, %c0_i32_0 : i32, i32
  }
  func.func @transform_3(%arg0: i32) -> (i32, i32) {
    %c0_i32 = arith.constant 0 : i32
    %c0_i32_0 = arith.constant 0 : i32
    %c0_i32_1 = arith.constant 0 : i32
    return %c0_i32, %c0_i32_0 : i32, i32
  }
  func.func @transform_4(%arg0: i32) -> (i32, i32) {
    %c0_i32 = arith.constant 0 : i32
    %c0_i32_0 = arith.constant 0 : i32
    %c0_i32_1 = arith.constant 0 : i32
    return %c0_i32, %c0_i32_0 : i32, i32
  }
  func.func @transform_5(%arg0: i32) -> (i32, i32) {
    %c0_i32 = arith.constant 0 : i32
    %c0_i32_0 = arith.constant 0 : i32
    return %arg0, %c0_i32 : i32, i32
  }
}

</mosaic_0001>

<bundles_post_ra>
// kernel: tpu_custom_call.1
= control target key start
LH: loop header
LB: loop body
LE: loop exit
PB: predicated region body
PF: predicated region fallthrough
CT: control target
= control target key end

     0   :  { %10 = vsyncpa [#allocation3], 0  ;;  %s702_s0 = inlined_call_operand.hbm [shape: f32[8,384], index: 0, kind: input, shape index: {}]   ;;  %s703_s1 = inlined_call_operand.hbm [shape: f32[384,128], index: 1, kind: input, shape index: {}]   ;;  %s704_s2 = inlined_call_operand.vmem [shape: f32[1,128], index: 2, kind: input, shape index: {}]   ;;  %s705_s3 = inlined_call_operand.hbm [shape: f32[128,128], index: 3, kind: input, shape index: {}]   ;;  %s706_s4 = inlined_call_operand.vmem [shape: f32[1,128], index: 4, kind: input, shape index: {}]   ;;  %s707_s5 = inlined_call_operand.hbm [shape: f32[8,128], index: 5, kind: output, shape index: {}]  }
   0x1   :  { %11 = vsyncpa [#allocation6], 0 }
   0x2   :  { %12 = vsyncpa [#allocation4], 0  ;;  %s606_s18 = smov [#allocation5]  }
   0x3   :  { %s28_s19 = sshll.u32 %s606_s18, 4  ;;  %s29_s19 = int_to_ptr.vmem [resolvable:$true] %s28_s19 }
   0x4   :  { %s528_s20 = scalar_lea.vmem %s29_s19, 6144  ;;  %p533_p1 = scmp.lt.s32.totalorder %s29_s19, %s29_s19 }
   0x5   :  { %p529_p0 = scmp.ne.s32.totalorder %s29_s19, %s528_s20  ;;  %p534_p2 = scmp.lt.s32.totalorder %s528_s20, %s528_s20 }
   0x7   :  { %p535_p3 = por %p534_p2, %p533_p1 }
   0x9   :  { %p536_p4 = pnand %p535_p3, %p529_p0 }
   0xb   :  { %539 = shalt.err (!%p536_p4)
}
   0xc   :  { %s607_s21 = smov 128   ;;  %s608_s22 = smov 8  }
   0xd   :  { %34 = dma.hbm_to_vmem [thread:$0]  %s703_s1, 6144, %s29_s19, [#allocation6], %s607_s21, %s607_s21, %s608_s22  }
   0xe   :  { %s609_s25 = smov [#allocation2]   ;;  %s610_s27 = smov [#allocation7]  }
   0xf   :  { %s19_s26 = sshll.u32 %s609_s25, 4  ;;  %s42_s28 = sshll.u32 %s610_s27, 4  ;;  %s20_s26 = int_to_ptr.vmem [resolvable:$true] %s19_s26  ;;  %s43_s28 = int_to_ptr.vmem [resolvable:$true] %s42_s28 }
  0x10   :  { %s548_s29 = scalar_lea.vmem %s20_s26, 384  ;;  %p553_p6 = scmp.lt.s32.totalorder %s20_s26, %s20_s26 }
  0x11   :  { %p549_p5 = scmp.ne.s32.totalorder %s20_s26, %s548_s29  ;;  %p554_p7 = scmp.lt.s32.totalorder %s548_s29, %s548_s29 }
  0x13   :  { %p555_p8 = por %p554_p7, %p553_p6 }
  0x15   :  { %p556_p9 = pnand %p555_p8, %p549_p5 }
  0x17   :  { %559 = shalt.err (!%p556_p9)
}
  0x18   :  { %22 = dma.hbm_to_vmem [thread:$0]  %s702_s0, 384, %s20_s26, [#allocation3]  }
  0x19   :  { %s568_s7 = scalar_lea.vmem %s43_s28, 2048  ;;  %p573_p11 = scmp.lt.s32.totalorder %s43_s28, %s43_s28 }
  0x1a   :  { %p569_p10 = scmp.ne.s32.totalorder %s43_s28, %s568_s7  ;;  %p574_p12 = scmp.lt.s32.totalorder %s568_s7, %s568_s7 }
  0x1c   :  { %p575_p13 = por %p574_p12, %p573_p11 }
  0x1e   :  { %p576_p0 = pnand %p575_p13, %p569_p10 }
  0x20   :  { %579 = shalt.err (!%p576_p0)
}
  0x21   :  { %48 = dma.hbm_to_vmem [thread:$0]  %s705_s3, 2048, %s43_s28, [#allocation6], %s607_s21, %s607_s21, %s608_s22  }
  0x22   :  { %600 = dma.done.wait [#allocation3], 384  }
  0x23   :  { %601 = vsyncadd [#allocation3], 4294966912 }
  0x24   :  { %602 = dma.done.wait [#allocation6], 8192  }
  0x25   :  { %603 = vsyncadd [#allocation6], 4294959104  ;;  %v611_v0 = vmov 0.0   ;;  %vm612_vm0 = vmmov 0   ;;  %v94_v1 = vld [vmem:[#allocation5 + $0xf8] sm:$0xff]  ;;  %v93_v3 = vld [vmem:[#allocation5 + $0xf0] sm:$0xff] }
  0x26   :  { %442 = vmatprep.subr.mxu1 %v611_v0  ;;  %474 = vmatprep.mubr.msk.f32.mxu1 %vm612_vm0, %v611_v0  ;;  %v78_v2 = vld [vmem:[#allocation5 + $0x78] sm:$0xff]  ;;  %v77_v4 = vld [vmem:[#allocation5 + $0x70] sm:$0xff]  ;;  %v92_v5 = vld [vmem:[#allocation5 + $0xe8] sm:$0xff]  ;;  %s613_s11 = smov [#allocation8]  }
  0x27   :  { %373 = vmatprep.subr.mxu0 %v94_v1  ;;  %v110_v6 = vld [vmem:[#allocation5 + $0x178] sm:$0xff]  ;;  %v76_v7 = vld [vmem:[#allocation5 + $0x68] sm:$0xff]  ;;  %v109_v8 = vld [vmem:[#allocation5 + $0x170] sm:$0xff]  ;;  %s361_s12 = sshll.u32 %s613_s11, 4  ;;  %s362_s12 = int_to_ptr.vmem [resolvable:$true] %s361_s12 }
  0x28   :  { %374 = vmatpush3.msra.mxu0 %v78_v2  ;;  %443 = vmatpush3.msra.mxu1 %v110_v6  ;;  %v91_v9 = vld [vmem:[#allocation5 + $0xe0] sm:$0xff]  ;;  %v108_v10 = vld [vmem:[#allocation5 + $0x168] sm:$0xff]  ;;  %v90_v12 = vld [vmem:[#allocation5 + $0xd8] sm:$0xff]  ;;  %p585_p2 = scmp.lt.s32.totalorder %s362_s12, %s362_s12 }
  0x29   :  { %375 = vmatprep.subr.mxu0 %v93_v3  ;;  %444 = vmatprep.subr.mxu1 %v611_v0  ;;  %v75_v11 = vld [vmem:[#allocation5 + $0x60] sm:$0xff]  ;;  %v74_v14 = vld [vmem:[#allocation5 + $0x58] sm:$0xff]  ;;  %v89_v15 = vld [vmem:[#allocation5 + $0xd0] sm:$0xff] }
  0x2a   :  { %376 = vmatpush3.msra.mxu0 %v77_v4  ;;  %445 = vmatpush3.msra.mxu1 %v109_v8  ;;  %v107_v13 = vld [vmem:[#allocation5 + $0x160] sm:$0xff]  ;;  %v106_v16 = vld [vmem:[#allocation5 + $0x158] sm:$0xff]  ;;  %v73_v17 = vld [vmem:[#allocation5 + $0x50] sm:$0xff] }
  0x2b   :  { %377 = vmatprep.subr.mxu0 %v92_v5  ;;  %446 = vmatprep.subr.mxu1 %v611_v0  ;;  %v88_v18 = vld [vmem:[#allocation5 + $0xc8] sm:$0xff]  ;;  %v105_v19 = vld [vmem:[#allocation5 + $0x150] sm:$0xff]  ;;  %v87_v21 = vld [vmem:[#allocation5 + $0xc0] sm:$0xff] }
  0x2c   :  { %378 = vmatpush3.msra.mxu0 %v76_v7  ;;  %447 = vmatpush3.msra.mxu1 %v108_v10  ;;  %v72_v20 = vld [vmem:[#allocation5 + $0x48] sm:$0xff]  ;;  %v71_v23 = vld [vmem:[#allocation5 + $0x40] sm:$0xff]  ;;  %v86_v24 = vld [vmem:[#allocation5 + $0xb8] sm:$0xff] }
  0x2d   :  { %379 = vmatprep.subr.mxu0 %v91_v9  ;;  %448 = vmatprep.subr.mxu1 %v611_v0  ;;  %v104_v22 = vld [vmem:[#allocation5 + $0x148] sm:$0xff]  ;;  %v103_v25 = vld [vmem:[#allocation5 + $0x140] sm:$0xff]  ;;  %v70_v26 = vld [vmem:[#allocation5 + $0x38] sm:$0xff] }
  0x2e   :  { %380 = vmatpush3.msra.mxu0 %v75_v11  ;;  %449 = vmatpush3.msra.mxu1 %v107_v13  ;;  %v85_v27 = vld [vmem:[#allocation5 + $0xb0] sm:$0xff]  ;;  %v102_v28 = vld [vmem:[#allocation5 + $0x138] sm:$0xff]  ;;  %v84_v30 = vld [vmem:[#allocation5 + $0xa8] sm:$0xff] }
  0x2f   :  { %381 = vmatprep.subr.mxu0 %v90_v12  ;;  %450 = vmatprep.subr.mxu1 %v611_v0  ;;  %v69_v29 = vld [vmem:[#allocation5 + $0x30] sm:$0xff]  ;;  %v68_v32 = vld [vmem:[#allocation5 + $0x28] sm:$0xff]  ;;  %v83_v33 = vld [vmem:[#allocation5 + $0xa0] sm:$0xff] }
  0x30   :  { %382 = vmatpush3.msra.mxu0 %v74_v14  ;;  %451 = vmatpush3.msra.mxu1 %v106_v16  ;;  %v101_v31 = vld [vmem:[#allocation5 + $0x130] sm:$0xff]  ;;  %v100_v34 = vld [vmem:[#allocation5 + $0x128] sm:$0xff]  ;;  %v67_v35 = vld [vmem:[#allocation5 + $0x20] sm:$0xff] }
  0x31   :  { %383 = vmatprep.subr.mxu0 %v89_v15  ;;  %452 = vmatprep.subr.mxu1 %v611_v0  ;;  %v82_v36 = vld [vmem:[#allocation5 + $0x98] sm:$0xff]  ;;  %v99_v37 = vld [vmem:[#allocation5 + $0x120] sm:$0xff]  ;;  %v81_v39 = vld [vmem:[#allocation5 + $0x90] sm:$0xff] }
  0x32   :  { %384 = vmatpush3.msra.mxu0 %v73_v17  ;;  %453 = vmatpush3.msra.mxu1 %v105_v19  ;;  %v66_v38 = vld [vmem:[#allocation5 + $0x18] sm:$0xff]  ;;  %v65_v41 = vld [vmem:[#allocation5 + $0x10] sm:$0xff]  ;;  %v80_v42 = vld [vmem:[#allocation5 + $0x88] sm:$0xff] }
  0x33   :  { %385 = vmatprep.subr.mxu0 %v88_v18  ;;  %454 = vmatprep.subr.mxu1 %v611_v0  ;;  %v98_v40 = vld [vmem:[#allocation5 + $0x118] sm:$0xff]  ;;  %v668_v43 = vld [vmem:[#allocation2 + $0x8] sm:$0xff]  ;;  %v64_v44 = vld [vmem:[#allocation5 + $0x8] sm:$0xff] }
  0x34   :  { %386 = vmatpush3.msra.mxu0 %v72_v20  ;;  %455 = vmatpush3.msra.mxu1 %v104_v22  ;;  %v97_v45 = vld [vmem:[#allocation5 + $0x110] sm:$0xff]  ;;  %v79_v46 = vld [vmem:[#allocation5 + $0x80] sm:$0xff]  ;;  %v96_v48 = vld [vmem:[#allocation5 + $0x108] sm:$0xff] }
  0x35   :  { %387 = vmatprep.subr.mxu0 %v87_v21  ;;  %456 = vmatprep.subr.mxu1 %v611_v0  ;;  %v63_v47 = vld [vmem:[#allocation5] sm:$0xff]  ;;  %v60_v49 = vld [vmem:[#allocation2] sm:$0xff]  ;;  %v62_v51 = vld [vmem:[#allocation2 + $0x10] sm:$0xff] }
  0x36   :  { %388 = vmatpush3.msra.mxu0 %v71_v23  ;;  %457 = vmatpush3.msra.mxu1 %v103_v25  ;;  %v95_v50 = vld [vmem:[#allocation5 + $0x100] sm:$0xff]  ;;  %v274_v52 = vld [vmem:[#allocation7 + $0x78] sm:$0xff]  ;;  %v273_v53 = vld [vmem:[#allocation7 + $0x70] sm:$0xff] }
  0x37   :  { %389 = vmatprep.subr.mxu0 %v86_v24  ;;  %458 = vmatprep.subr.mxu1 %v611_v0  ;;  %v272_v54 = vld [vmem:[#allocation7 + $0x68] sm:$0xff]  ;;  %v271_v55 = vld [vmem:[#allocation7 + $0x60] sm:$0xff]  ;;  %v270_v56 = vld [vmem:[#allocation7 + $0x58] sm:$0xff] }
  0x38   :  { %390 = vmatpush3.msra.mxu0 %v70_v26  ;;  %459 = vmatpush3.msra.mxu1 %v102_v28  ;;  %v269_v57 = vld [vmem:[#allocation7 + $0x50] sm:$0xff]  ;;  %v268_v58 = vld [vmem:[#allocation7 + $0x48] sm:$0xff]  ;;  %v267_v59 = vld [vmem:[#allocation7 + $0x40] sm:$0xff] }
  0x39   :  { %391 = vmatprep.subr.mxu0 %v85_v27  ;;  %460 = vmatprep.subr.mxu1 %v611_v0  ;;  %v266_v60 = vld [vmem:[#allocation7 + $0x38] sm:$0xff]  ;;  %v265_v61 = vld [vmem:[#allocation7 + $0x30] sm:$0xff]  ;;  %v264_v62 = vld [vmem:[#allocation7 + $0x28] sm:$0xff] }
  0x3a   :  { %392 = vmatpush3.msra.mxu0 %v69_v29  ;;  %461 = vmatpush3.msra.mxu1 %v101_v31  ;;  %v263_v63 = vld [vmem:[#allocation7 + $0x20] sm:$0xff]  ;;  %v262_v1 = vld [vmem:[#allocation7 + $0x18] sm:$0xff]  ;;  %v261_v2 = vld [vmem:[#allocation7 + $0x10] sm:$0xff] }
  0x3b   :  { %393 = vmatprep.subr.mxu0 %v84_v30  ;;  %462 = vmatprep.subr.mxu1 %v611_v0  ;;  %v260_v3 = vld [vmem:[#allocation7 + $0x8] sm:$0xff]  ;;  %v259_v4 = vld [vmem:[#allocation7] sm:$0xff] }
  0x3c   :  { %394 = vmatpush3.msra.mxu0 %v68_v32  ;;  %463 = vmatpush3.msra.mxu1 %v100_v34  ;;  %v371_v7 = vld [vmem:[%s704_s2] ss:$0 sm:$0xff]  ;;  %s580_s2 = scalar_lea.vmem %s362_s12, 128 }
  0x3d   :  { %395 = vmatprep.subr.mxu0 %v83_v33  ;;  %464 = vmatprep.subr.mxu1 %v611_v0  ;;  %v372_v14 = vld [vmem:[%s706_s4] ss:$0 sm:$0xff]  ;;  %p581_p1 = scmp.ne.s32.totalorder %s362_s12, %s580_s2  ;;  %p586_p3 = scmp.lt.s32.totalorder %s580_s2, %s580_s2 }
  0x3e   :  { %396 = vmatpush3.msra.mxu0 %v67_v35  ;;  %465 = vmatpush3.msra.mxu1 %v99_v37 }
  0x3f   :  { %397 = vmatprep.subr.mxu0 %v82_v36  ;;  %466 = vmatprep.subr.mxu1 %v611_v0  ;;  %p587_p4 = por %p586_p3, %p585_p2 }
  0x40   :  { %398 = vmatpush3.msra.mxu0 %v66_v38  ;;  %467 = vmatpush3.msra.mxu1 %v98_v40 }
  0x41   :  { %399 = vmatprep.subr.mxu0 %v81_v39  ;;  %468 = vmatprep.subr.mxu1 %v611_v0  ;;  %p588_p5 = pnand %p587_p4, %p581_p1 }
  0x42   :  { %400 = vmatpush3.msra.mxu0 %v65_v41  ;;  %182 = vmatprep.mubr.f32.mxu0 %v668_v43 }
  0x43   :  { %401 = vmatprep.subr.mxu0 %v80_v42  ;;  %469 = vmatpush3.msra.mxu1 %v97_v45 }
  0x44   :  { %402 = vmatpush3.msra.mxu0 %v64_v44  ;;  %470 = vmatprep.subr.mxu1 %v611_v0 }
  0x45   :  { %403 = vmatprep.subr.mxu0 %v79_v46  ;;  %471 = vmatpush3.msra.mxu1 %v96_v48 }
  0x46   :  { %404 = vmatpush3.msra.mxu0 %v63_v47  ;;  %472 = vmatprep.subr.mxu1 %v611_v0 }
  0x47   :  { %183 = vmatmul.mubr.f32.vlgmr.msra.gmra.mxu0 %v60_v49  ;;  %473 = vmatpush3.msra.mxu1 %v95_v50 }
  0x48   :  { %477 = vmatprep.subr.mxu0 %v611_v0  ;;  %475 = vmatmul.mubr.f32.vlgmr.msra.gmra.mxu1 %v62_v51 }
  0x49   :  { %478 = vmatpush3.msra.mxu0 %v274_v52  ;;  %509 = vmatprep.mubr.msk.f32.mxu0 %vm612_vm0, %v611_v0 }
  0x4a   :  { %479 = vmatprep.subr.mxu0 %v611_v0 }
  0x4b   :  { %480 = vmatpush3.msra.mxu0 %v273_v53 }
  0x4c   :  { %481 = vmatprep.subr.mxu0 %v611_v0 }
  0x4d   :  { %482 = vmatpush3.msra.mxu0 %v272_v54 }
  0x4e   :  { %483 = vmatprep.subr.mxu0 %v611_v0 }
  0x4f   :  { %484 = vmatpush3.msra.mxu0 %v271_v55 }
  0x50   :  { %485 = vmatprep.subr.mxu0 %v611_v0 }
  0x51   :  { %486 = vmatpush3.msra.mxu0 %v270_v56 }
  0x52   :  { %487 = vmatprep.subr.mxu0 %v611_v0 }
  0x53   :  { %488 = vmatpush3.msra.mxu0 %v269_v57 }
  0x54   :  { %489 = vmatprep.subr.mxu0 %v611_v0 }
  0x55   :  { %490 = vmatpush3.msra.mxu0 %v268_v58 }
  0x56   :  { %491 = vmatprep.subr.mxu0 %v611_v0 }
  0x57   :  { %492 = vmatpush3.msra.mxu0 %v267_v59 }
  0x58   :  { %493 = vmatprep.subr.mxu0 %v611_v0 }
  0x59   :  { %494 = vmatpush3.msra.mxu0 %v266_v60 }
  0x5a   :  { %495 = vmatprep.subr.mxu0 %v611_v0 }
  0x5b   :  { %496 = vmatpush3.msra.mxu0 %v265_v61 }
  0x5c   :  { %497 = vmatprep.subr.mxu0 %v611_v0 }
  0x5d   :  { %498 = vmatpush3.msra.mxu0 %v264_v62 }
  0x5e   :  { %499 = vmatprep.subr.mxu0 %v611_v0 }
  0x5f   :  { %500 = vmatpush3.msra.mxu0 %v263_v63 }
  0x60   :  { %501 = vmatprep.subr.mxu0 %v611_v0 }
  0x61   :  { %502 = vmatpush3.msra.mxu0 %v262_v1 }
  0x62   :  { %503 = vmatprep.subr.mxu0 %v611_v0 }
  0x63   :  { %504 = vmatpush3.msra.mxu0 %v261_v2 }
  0x64   :  { %505 = vmatprep.subr.mxu0 %v611_v0 }
  0x65   :  { %506 = vmatpush3.msra.mxu0 %v260_v3 }
  0x66   :  { %507 = vmatprep.subr.mxu0 %v611_v0 }
  0x67   :  { %508 = vmatpush3.msra.mxu0 %v259_v4 }
 0x107   :  { %v405_v5 = vpop.f32.mrf.mxu0 }
 0x108   :  { %v254_v8 = vpop.f32.mrf.mxu1 }
 0x109   :  { %v406_v6 = vpop.f32.mrf.mxu0 }
 0x10a   :  { %v407_v9 = vadd.f32 %v406_v6, %v405_v5  ;;  %v476_v10 = vpop.f32.mrf.mxu1 }
 0x10c   :  { %v185_v11 = vadd.f32 %v407_v9, %v371_v7 }
 0x10e   :  { %v255_v12 = vadd.f32 %v254_v8, %v185_v11 }
 0x110   :  { %v258_v13 = vmax.f32 %v255_v12, 0.0 }
 0x112   :  { %510 = vmatmul.mubr.f32.vlgmr.msra.gmra.mxu0 %v258_v13 }
 0x1d2   :  { %v348_v0 = vpop.f32.mrf.mxu0 }
 0x1d3   :  { %v349_v15 = vadd.f32 %v372_v14, %v348_v0 }
 0x1d4   :  { %v511_v16 = vpop.f32.mrf.mxu0 }
 0x1d5   :  { %v352_v17 = vmax.f32 %v349_v15, 0.0 }
 0x1d7   :  { %v353_v18 = vadd.f32 %v352_v17, %v668_v43 }
 0x1d9   :  { %354 = vst [vmem:[#allocation8] sm:$0xff] %v353_v18 }
 0x1da   :  { %591 = shalt.err (!%p588_p5)
}
 0x1db   :  { %364 = dma.vmem_to_hbm [thread:$0]  %s362_s12, 128, %s707_s5, [#allocation4]  }
 0x1dc   :  { %604 = dma.done.wait [#allocation4], 128  }
 0x1dd   :  { %605 = vsyncadd [#allocation4], 4294967168 }
 0x1de   :  { %368 = vsyncpa [#allocation3], 1 }
 0x1df   :  { %369 = vsyncpa [#allocation6], 1 }
 0x1e0   :  { %370 = vsyncpa [#allocation4], 1 }

</bundles_post_ra>
